<compile_context>
chip_gen: v5e
topology: v5e:2x2
jax: 0.10.0
libtpu: 0.0.40
codegen_flags: <defaults>
</compile_context>

<pallas_src>
import functools

import jax
import jax.numpy as jnp
from jax.experimental import pallas as pl
from jax.experimental.pallas import tpu as pltpu


def _vmem_capacity_bytes():
    """Physical VMEM per core (128 MiB v5e/v6e, 64 MiB v7x); conservative fallback."""
    try:
        cap = int(pltpu.get_tpu_info().vmem_capacity_bytes)
        if cap > 0:
            return cap
    except Exception:
        pass
    return 64 * 1024 * 1024


def _round_up(x, m):
    return -(-x // m) * m


def _choose_tile(hw, cin, cout, x_itemsize, out_itemsize, budget_bytes):
    """Largest multiple-of-128 lane tile whose double-buffered input+output
    streaming footprint plus resident accumulators/weights fits the budget.
    Works for any hw (cdiv tiling; ragged last tile handled in the kernels)."""
    hw_pad = _round_up(hw, 128)
    # streamed bytes per lane: double-buffered x block + double-buffered out block
    per_lane = 2 * cin * x_itemsize + 2 * cout * max(out_itemsize, x_itemsize)
    # resident: pass-1 (colsum + gram) accumulators, pass-2 folded weight + shift
    resident = (2 * (cin * cin + cin) * 4
                + 2 * (cout * cin * x_itemsize + cout * 4))
    avail = max(budget_bytes - resident, budget_bytes // 4)
    tile = (avail // per_lane) // 128 * 128
    return int(max(128, min(tile, hw_pad)))


# ---------------- Pass 1: per-(batch, chunk) partial statistics of X ---------
def _stats_kernel(x_ref, sum_ref, gram_ref, *, tile, tiles_per_chunk, hw, needs_mask):
    # x_ref: (Cin, TILE) with pixels on the lane axis.
    # sum_ref: (Cin, 1) accumulator, gram_ref: (Cin, Cin) accumulator.
    @pl.when(pl.program_id(2) == 0)
    def _init():
        sum_ref[...] = jnp.zeros_like(sum_ref)
        gram_ref[...] = jnp.zeros_like(gram_ref)

    x = x_ref[...]
    if needs_mask:
        # Zero out lanes past the true pixel count (ragged last tile and any
        # chunk-slack tiles) so they never enter the statistics.
        g = pl.program_id(1) * tiles_per_chunk + pl.program_id(2)
        lane = jax.lax.broadcasted_iota(jnp.int32, x.shape, dimension=1)
        valid = (g * tile + lane) < hw
        x = jnp.where(valid, x, jnp.zeros_like(x))

    # Lane-axis reduce (XLU) for the per-channel column sum.
    sum_ref[...] += jnp.sum(x.astype(jnp.float32), axis=-1, keepdims=True)
    # Tiny MXU matmul: X X^T contracting over the lane (pixel) axis.
    gram_ref[...] += jax.lax.dot_general(
        x, x, dimension_numbers=(((1,), (1,)), ((), ())),
        preferred_element_type=jnp.float32)


# ---------------- Pass 2: streamed matmul + affine + ReLU --------------------
def _apply_kernel(x_ref, w_ref, shift_ref, o_ref):
    # w_ref already folds the BN scale: w_scaled = (gamma * inv_std)[:, None] * W.
    y = jnp.dot(w_ref[...], x_ref[...], preferred_element_type=jnp.float32)
    o_ref[...] = jnp.maximum(y + shift_ref[...], 0.0).astype(o_ref.dtype)


def conv_bn_relu(x_nchw, weight, gamma, beta, *, padding=1, eps=1e-5,
                 stream_dtype=None, tile=None, pixel_chunks=None):
    """x_nchw: (N, Cin, H, W); weight: (Cout, Cin, 1, 1); gamma/beta: (Cout,).
    Returns (N, Cout, H+2p, W+2p): Conv2d(1x1, pad=p, no bias) ->
    BatchNorm2d (training-mode batch stats) -> ReLU."""
    n, cin, h, w = x_nchw.shape
    cout = weight.shape[0]
    hw = h * w
    hp, wp = h + 2 * padding, w + 2 * padding
    m_pad = float(n * hp * wp)  # BN stats are over the *padded* conv output

    out_dtype = x_nchw.dtype
    # NCHW already has pixels minor: a reshape, not a copy.
    x3 = x_nchw.reshape(n, cin, hw)
    if stream_dtype is not None and x3.dtype != jnp.dtype(stream_dtype):
        x3 = x3.astype(stream_dtype)  # halve X read bytes (memory-bound kernel)
    x_itemsize = jnp.dtype(x3.dtype).itemsize
    out_itemsize = jnp.dtype(out_dtype).itemsize

    vmem_cap = _vmem_capacity_bytes()
    vmem_limit = int(min(vmem_cap * 3 // 4, 100 * 1024 * 1024))
    if tile is None:
        tile = _choose_tile(hw, cin, cout, x_itemsize, out_itemsize,
                            budget_bytes=int(vmem_limit * 0.8))
    nt = pl.cdiv(hw, tile)

    # v7x: ensure both TensorCores get pass-1 work even when N is tiny by
    # splitting the pixel axis into independent parallel partial-stat chunks.
    if pixel_chunks is None:
        pixel_chunks = 2 if (n < 2 and nt >= 2) else 1
    pixel_chunks = max(1, min(int(pixel_chunks), nt))
    tpc = pl.cdiv(nt, pixel_chunks)
    needs_mask = (tile * tpc * pixel_chunks != hw)

    # ---------------- pass 1: statistics ----------------
    last_tile = nt - 1

    def x_stats_map(b, c, t):
        g = c * tpc + t
        return (b, 0, jnp.minimum(g, last_tile))  # clamp chunk-slack tiles

    stats_kernel = functools.partial(
        _stats_kernel, tile=tile, tiles_per_chunk=tpc, hw=hw, needs_mask=needs_mask)

    stats_cost = pl.CostEstimate(
        flops=2 * n * hw * cin * cin + n * hw * cin,
        transcendentals=0,
        bytes_accessed=n * hw * cin * x_itemsize
        + n * pixel_chunks * cin * (cin + 1) * 4)

    psum, pgram = pl.pallas_call(
        stats_kernel,
        out_shape=(jax.ShapeDtypeStruct((n, pixel_chunks, cin, 1), jnp.float32),
                   jax.ShapeDtypeStruct((n, pixel_chunks, cin, cin), jnp.float32)),
        grid=(n, pixel_chunks, tpc),
        in_specs=[pl.BlockSpec((None, cin, tile), x_stats_map)],
        out_specs=(pl.BlockSpec((None, None, cin, 1), lambda b, c, t: (b, c, 0, 0)),
                   pl.BlockSpec((None, None, cin, cin), lambda b, c, t: (b, c, 0, 0))),
        compiler_params=pltpu.CompilerParams(
            dimension_semantics=("parallel", "parallel", "arbitrary"),
            vmem_limit_bytes=vmem_limit),
        cost_estimate=stats_cost,
    )(x3)

    sum_x = jnp.sum(psum, axis=(0, 1))   # (Cin, 1)
    gram = jnp.sum(pgram, axis=(0, 1))   # (Cin, Cin)

    # Analytic train-mode BatchNorm stats of y = W x over the padded extent
    # (zero border pixels contribute nothing to sum_x / gram, only to m_pad).
    w2d = weight.reshape(cout, cin).astype(jnp.float32)             # (Cout, Cin)
    mean = (w2d @ sum_x) / m_pad                                    # (Cout, 1)
    ey2 = jnp.einsum('oc,cd,od->o', w2d, gram, w2d)[:, None] / m_pad
    var = jnp.maximum(ey2 - mean * mean, 0.0)                       # biased variance
    inv_std = jax.lax.rsqrt(var + eps)
    scale = gamma.astype(jnp.float32)[:, None] * inv_std            # (Cout, 1)
    shift = beta.astype(jnp.float32)[:, None] - mean * scale        # (Cout, 1)
    w_scaled = (scale * w2d).astype(x3.dtype)                       # fold BN scale into W

    # ---------------- pass 2: matmul + shift + ReLU ----------------
    apply_cost = pl.CostEstimate(
        flops=2 * n * hw * cin * cout + 2 * n * hw * cout,
        transcendentals=0,
        bytes_accessed=n * hw * (cin * x_itemsize + cout * out_itemsize))

    out3 = pl.pallas_call(
        _apply_kernel,
        out_shape=jax.ShapeDtypeStruct((n, cout, hw), out_dtype),
        grid=(n, nt),
        in_specs=[
            pl.BlockSpec((None, cin, tile), lambda b, t: (b, 0, t)),
            pl.BlockSpec((cout, cin), lambda b, t: (0, 0)),
            pl.BlockSpec((cout, 1), lambda b, t: (0, 0)),
        ],
        out_specs=pl.BlockSpec((None, cout, tile), lambda b, t: (b, 0, t)),
        compiler_params=pltpu.CompilerParams(
            dimension_semantics=("parallel", "parallel"),
            vmem_limit_bytes=vmem_limit),
        cost_estimate=apply_cost,
    )(x3, w_scaled, shift)

    interior = out3.reshape(n, cout, h, w)
    if padding == 0:
        return interior

    # Border pixels: 1x1 conv output is exactly 0 there -> BN+ReLU = relu(shift)_c.
    border = jnp.maximum(shift, 0.0).astype(out_dtype).reshape(1, cout, 1, 1)
    out_full = jnp.broadcast_to(border, (n, cout, hp, wp))
    out_full = out_full.at[:, :, padding:padding + h, padding:padding + w].set(interior)
    return out_full


def _reference(x_nchw, weight, gamma, beta, *, padding=1, eps=1e-5):
    # Pure-JAX reference: pad -> 1x1 conv -> train-mode BN (biased var) -> ReLU.
    xp = jnp.pad(x_nchw, ((0, 0), (0, 0), (padding, padding), (padding, padding)))
    w2d = weight.reshape(weight.shape[0], weight.shape[1])
    y = jnp.einsum('nchw,oc->nohw', xp, w2d)
    mean = jnp.mean(y, axis=(0, 2, 3), keepdims=True)
    var = jnp.mean((y - mean) ** 2, axis=(0, 2, 3), keepdims=True)
    yhat = (y - mean) * jax.lax.rsqrt(var + eps)
    out = yhat * gamma.reshape(1, -1, 1, 1) + beta.reshape(1, -1, 1, 1)
    return jnp.maximum(out, 0.0)


if __name__ == "__main__":
    key = jax.random.PRNGKey(0)
    kx, kw, kg, kb = jax.random.split(key, 4)

    N, Cin, H, W = 2, 4, 16, 16
    Cout = 8

    x = jax.random.normal(kx, (N, Cin, H, W), dtype=jnp.float32)
    weight = jax.random.normal(kw, (Cout, Cin, 1, 1), dtype=jnp.float32) * 0.1
    gamma = 1.0 + 0.1 * jax.random.normal(kg, (Cout,), dtype=jnp.float32)
    beta = 0.1 * jax.random.normal(kb, (Cout,), dtype=jnp.float32)

    # Primary run.
    run = jax.jit(conv_bn_relu)
    out = jax.block_until_ready(run(x, weight, gamma, beta))
    ref = _reference(x, weight, gamma, beta)
    assert out.shape == (N, Cout, H + 2, W + 2), out.shape
    assert jnp.allclose(out, ref, atol=1e-4, rtol=1e-4), \
        float(jnp.max(jnp.abs(out - ref)))

    # Ragged pixel count (hw = 81 < 128): exercises masked stats + partial tiles.
    x2 = jax.random.normal(kx, (1, Cin, 9, 9), dtype=jnp.float32)
    out2 = jax.block_until_ready(jax.jit(conv_bn_relu)(x2, weight, gamma, beta))
    ref2 = _reference(x2, weight, gamma, beta)
    assert jnp.allclose(out2, ref2, atol=1e-4, rtol=1e-4), \
        float(jnp.max(jnp.abs(out2 - ref2)))

    # Forced small tile + pixel-chunked pass 1 (v7x two-TC path) + ragged mask.
    x3t = jax.random.normal(kw, (1, Cin, 13, 13), dtype=jnp.float32)
    run3 = jax.jit(functools.partial(conv_bn_relu, tile=128, pixel_chunks=2))
    out3t = jax.block_until_ready(run3(x3t, weight, gamma, beta))
    ref3 = _reference(x3t, weight, gamma, beta)
    assert jnp.allclose(out3t, ref3, atol=1e-4, rtol=1e-4), \
        float(jnp.max(jnp.abs(out3t - ref3)))

    # bf16 streaming variant (halves X read bytes); f32 accumulation, loose tol.
    run_bf = jax.jit(functools.partial(conv_bn_relu, stream_dtype=jnp.bfloat16))
    out_bf = jax.block_until_ready(run_bf(x, weight, gamma, beta))
    assert jnp.allclose(out_bf, ref, atol=5e-2, rtol=5e-2), \
        float(jnp.max(jnp.abs(out_bf - ref)))

    print("KERNEL_OK")
</pallas_src>

<mosaic_0001>
module attributes {stable_mosaic.version = 11 : i64} {
  func.func @_stats_kernel(%arg0: i32, %arg1: i32, %arg2: i32, %arg3: memref<1x4x256xf32, #tpu.memory_space<vmem>>, %arg4: memref<1x1x4x1xf32, #tpu.memory_space<vmem>>, %arg5: memref<1x1x4x4xf32, #tpu.memory_space<vmem>>) attributes {dimension_semantics = [#tpu.dimension_semantics<parallel>, #tpu.dimension_semantics<parallel>, #tpu.dimension_semantics<arbitrary>], iteration_bounds = array<i64: 2, 1, 1>, scalar_prefetch = 0 : i64, scratch_operands = 0 : i64, tpu.core_type = #tpu.core_type<tc>, window_params = [{transform_indices = @transform_0, window_bounds = array<i64: 1, 4, 256>}, {transform_indices = @transform_1, window_bounds = array<i64: 1, 1, 4, 1>}, {transform_indices = @transform_2, window_bounds = array<i64: 1, 1, 4, 4>}]} {
    %c0_i32 = arith.constant 0 : i32
    %0 = arith.cmpi eq, %arg2, %c0_i32 : i32
    %1 = arith.extui %0 : i1 to i32
    %c0_i32_0 = arith.constant 0 : i32
    %2 = arith.cmpi ne, %1, %c0_i32_0 : i32
    scf.if %2 {
      %cst_20 = arith.constant 0.000000e+00 : f32
      %20 = vector.broadcast %cst_20 : f32 to vector<4x1xf32>
      %c0_21 = arith.constant 0 : index
      %c0_22 = arith.constant 0 : index
      %c0_23 = arith.constant 0 : index
      %c0_24 = arith.constant 0 : index
      %21 = vector.load %arg4[%c0_21, %c0_22, %c0_23, %c0_24] : memref<1x1x4x1xf32, #tpu.memory_space<vmem>>, vector<1x1x4x1xf32>
      %22 = vector.shape_cast %21 : vector<1x1x4x1xf32> to vector<4x1xf32>
      %23 = vector.shape_cast %20 : vector<4x1xf32> to vector<1x1x4x1xf32>
      tpu.vector_store %arg4[%c0_21, %c0_22, %c0_23, %c0_24], %23 {strides = array<i32>} : memref<1x1x4x1xf32, #tpu.memory_space<vmem>>, vector<1x1x4x1xf32>,
      %cst_25 = arith.constant 0.000000e+00 : f32
      %24 = vector.broadcast %cst_25 : f32 to vector<4x4xf32>
      %c0_26 = arith.constant 0 : index
      %c0_27 = arith.constant 0 : index
      %c0_28 = arith.constant 0 : index
      %c0_29 = arith.constant 0 : index
      %25 = vector.load %arg5[%c0_26, %c0_27, %c0_28, %c0_29] : memref<1x1x4x4xf32, #tpu.memory_space<vmem>>, vector<1x1x4x4xf32>
      %26 = vector.shape_cast %25 : vector<1x1x4x4xf32> to vector<4x4xf32>
      %27 = vector.shape_cast %24 : vector<4x4xf32> to vector<1x1x4x4xf32>
      tpu.vector_store %arg5[%c0_26, %c0_27, %c0_28, %c0_29], %27 {strides = array<i32>} : memref<1x1x4x4xf32, #tpu.memory_space<vmem>>, vector<1x1x4x4xf32>,
    } else {
    }
    %c0 = arith.constant 0 : index
    %c0_1 = arith.constant 0 : index
    %c0_2 = arith.constant 0 : index
    %3 = vector.load %arg3[%c0, %c0_1, %c0_2] : memref<1x4x256xf32, #tpu.memory_space<vmem>>, vector<1x4x256xf32>
    %4 = vector.shape_cast %3 : vector<1x4x256xf32> to vector<4x256xf32>
    %c0_3 = arith.constant 0 : index
    %c0_4 = arith.constant 0 : index
    %c0_5 = arith.constant 0 : index
    %c0_6 = arith.constant 0 : index
    %5 = vector.load %arg4[%c0_3, %c0_4, %c0_5, %c0_6] : memref<1x1x4x1xf32, #tpu.memory_space<vmem>>, vector<1x1x4x1xf32>
    %6 = vector.shape_cast %5 : vector<1x1x4x1xf32> to vector<4x1xf32>
    %cst = arith.constant dense<0.000000e+00> : vector<4xf32>
    %7 = vector.multi_reduction <add>, %4, %cst [1] : vector<4x256xf32> to vector<4xf32>
    %8 = vector.shape_cast %7 : vector<4xf32> to vector<4x1xf32>
    %9 = arith.addf %6, %8 : vector<4x1xf32>
    %c0_7 = arith.constant 0 : index
    %c0_8 = arith.constant 0 : index
    %c0_9 = arith.constant 0 : index
    %c0_10 = arith.constant 0 : index
    %10 = vector.load %arg4[%c0_7, %c0_8, %c0_9, %c0_10] : memref<1x1x4x1xf32, #tpu.memory_space<vmem>>, vector<1x1x4x1xf32>
    %11 = vector.shape_cast %10 : vector<1x1x4x1xf32> to vector<4x1xf32>
    %12 = vector.shape_cast %9 : vector<4x1xf32> to vector<1x1x4x1xf32>
    tpu.vector_store %arg4[%c0_7, %c0_8, %c0_9, %c0_10], %12 {strides = array<i32>} : memref<1x1x4x1xf32, #tpu.memory_space<vmem>>, vector<1x1x4x1xf32>,
    %c0_11 = arith.constant 0 : index
    %c0_12 = arith.constant 0 : index
    %c0_13 = arith.constant 0 : index
    %c0_14 = arith.constant 0 : index
    %13 = vector.load %arg5[%c0_11, %c0_12, %c0_13, %c0_14] : memref<1x1x4x4xf32, #tpu.memory_space<vmem>>, vector<1x1x4x4xf32>
    %14 = vector.shape_cast %13 : vector<1x1x4x4xf32> to vector<4x4xf32>
    %cst_15 = arith.constant dense<0.000000e+00> : vector<4x4xf32>
    %15 = tpu.matmul %4, %4, %cst_15 {dimension_numbers = #tpu.dot_dimension_numbers<[1], [1], [0], [0], [0, 0, 1, 0], [], []>} : vector<4x256xf32>, vector<4x256xf32>, vector<4x4xf32> -> vector<4x4xf32>
    %16 = arith.addf %14, %15 : vector<4x4xf32>
    %c0_16 = arith.constant 0 : index
    %c0_17 = arith.constant 0 : index
    %c0_18 = arith.constant 0 : index
    %c0_19 = arith.constant 0 : index
    %17 = vector.load %arg5[%c0_16, %c0_17, %c0_18, %c0_19] : memref<1x1x4x4xf32, #tpu.memory_space<vmem>>, vector<1x1x4x4xf32>
    %18 = vector.shape_cast %17 : vector<1x1x4x4xf32> to vector<4x4xf32>
    %19 = vector.shape_cast %16 : vector<4x4xf32> to vector<1x1x4x4xf32>
    tpu.vector_store %arg5[%c0_16, %c0_17, %c0_18, %c0_19], %19 {strides = array<i32>} : memref<1x1x4x4xf32, #tpu.memory_space<vmem>>, vector<1x1x4x4xf32>,
    return
  }
  func.func @transform_0(%arg0: i32, %arg1: i32, %arg2: i32) -> (i32, i32, i32) {
    %c1_i32 = arith.constant 1 : i32
    %0 = arith.muli %arg1, %c1_i32 : i32
    %1 = arith.addi %0, %arg2 : i32
    %c0_i32 = arith.constant 0 : i32
    %2 = arith.minsi %1, %c0_i32 : i32
    %c0_i32_0 = arith.constant 0 : i32
    %c0_i32_1 = arith.constant 0 : i32
    return %arg0, %c0_i32_0, %2 : i32, i32, i32
  }
  func.func @transform_1(%arg0: i32, %arg1: i32, %arg2: i32) -> (i32, i32, i32, i32) {
    %c0_i32 = arith.constant 0 : i32
    %c0_i32_0 = arith.constant 0 : i32
    %c0_i32_1 = arith.constant 0 : i32
    return %arg0, %arg1, %c0_i32, %c0_i32_0 : i32, i32, i32, i32
  }
  func.func @transform_2(%arg0: i32, %arg1: i32, %arg2: i32) -> (i32, i32, i32, i32) {
    %c0_i32 = arith.constant 0 : i32
    %c0_i32_0 = arith.constant 0 : i32
    %c0_i32_1 = arith.constant 0 : i32
    return %arg0, %arg1, %c0_i32, %c0_i32_0 : i32, i32, i32, i32
  }
}

module attributes {stable_mosaic.version = 11 : i64} {
  func.func @_apply_kernel(%arg0: i32, %arg1: i32, %arg2: memref<1x4x256xf32, #tpu.memory_space<vmem>>, %arg3: memref<8x4xf32, #tpu.memory_space<vmem>>, %arg4: memref<8x1xf32, #tpu.memory_space<vmem>>, %arg5: memref<1x8x256xf32, #tpu.memory_space<vmem>>) attributes {dimension_semantics = [#tpu.dimension_semantics<parallel>, #tpu.dimension_semantics<parallel>], iteration_bounds = array<i64: 2, 1>, scalar_prefetch = 0 : i64, scratch_operands = 0 : i64, tpu.core_type = #tpu.core_type<tc>, window_params = [{transform_indices = @transform_0, window_bounds = array<i64: 1, 4, 256>}, {pipeline_mode = #tpu.pipeline_mode<synchronous>, transform_indices = @transform_1, window_bounds = array<i64: 8, 4>}, {pipeline_mode = #tpu.pipeline_mode<synchronous>, transform_indices = @transform_2, window_bounds = array<i64: 8, 1>}, {transform_indices = @transform_3, window_bounds = array<i64: 1, 8, 256>}]} {
    %c0 = arith.constant 0 : index
    %c0_0 = arith.constant 0 : index
    %0 = vector.load %arg3[%c0, %c0_0] : memref<8x4xf32, #tpu.memory_space<vmem>>, vector<8x4xf32>
    %c0_1 = arith.constant 0 : index
    %c0_2 = arith.constant 0 : index
    %c0_3 = arith.constant 0 : index
    %1 = vector.load %arg2[%c0_1, %c0_2, %c0_3] : memref<1x4x256xf32, #tpu.memory_space<vmem>>, vector<1x4x256xf32>
    %2 = vector.shape_cast %1 : vector<1x4x256xf32> to vector<4x256xf32>
    %cst = arith.constant dense<0.000000e+00> : vector<8x256xf32>
    %3 = tpu.matmul %0, %2, %cst {dimension_numbers = #tpu.dot_dimension_numbers<[1], [0], [0], [1], [0, 0, 1, 1], [], []>} : vector<8x4xf32>, vector<4x256xf32>, vector<8x256xf32> -> vector<8x256xf32>
    %c0_4 = arith.constant 0 : index
    %c0_5 = arith.constant 0 : index
    %4 = vector.load %arg4[%c0_4, %c0_5] : memref<8x1xf32, #tpu.memory_space<vmem>>, vector<8x1xf32>
    %5 = vector.broadcast %4 : vector<8x1xf32> to vector<8x256xf32>
    %6 = arith.addf %3, %5 : vector<8x256xf32>
    %cst_6 = arith.constant 0.000000e+00 : f32
    %7 = vector.broadcast %cst_6 : f32 to vector<8x256xf32>
    %8 = arith.maximumf %6, %7 : vector<8x256xf32>
    %c0_7 = arith.constant 0 : index
    %c0_8 = arith.constant 0 : index
    %c0_9 = arith.constant 0 : index
    %9 = vector.load %arg5[%c0_7, %c0_8, %c0_9] : memref<1x8x256xf32, #tpu.memory_space<vmem>>, vector<1x8x256xf32>
    %10 = vector.shape_cast %9 : vector<1x8x256xf32> to vector<8x256xf32>
    %11 = vector.shape_cast %8 : vector<8x256xf32> to vector<1x8x256xf32>
    tpu.vector_store %arg5[%c0_7, %c0_8, %c0_9], %11 {strides = array<i32>} : memref<1x8x256xf32, #tpu.memory_space<vmem>>, vector<1x8x256xf32>,
    return
  }
  func.func @transform_0(%arg0: i32, %arg1: i32) -> (i32, i32, i32) {
    %c0_i32 = arith.constant 0 : i32
    %c0_i32_0 = arith.constant 0 : i32
    return %arg0, %c0_i32, %arg1 : i32, i32, i32
  }
  func.func @transform_1(%arg0: i32, %arg1: i32) -> (i32, i32) {
    %c0_i32 = arith.constant 0 : i32
    %c0_i32_0 = arith.constant 0 : i32
    %c0_i32_1 = arith.constant 0 : i32
    return %c0_i32, %c0_i32_0 : i32, i32
  }
  func.func @transform_2(%arg0: i32, %arg1: i32) -> (i32, i32) {
    %c0_i32 = arith.constant 0 : i32
    %c0_i32_0 = arith.constant 0 : i32
    %c0_i32_1 = arith.constant 0 : i32
    return %c0_i32, %c0_i32_0 : i32, i32
  }
  func.func @transform_3(%arg0: i32, %arg1: i32) -> (i32, i32, i32) {
    %c0_i32 = arith.constant 0 : i32
    %c0_i32_0 = arith.constant 0 : i32
    return %arg0, %c0_i32, %arg1 : i32, i32, i32
  }
}

</mosaic_0001>

<bundles_post_ra>
// kernel: conv_bn_relu.2
= control target key start
LH: loop header
LB: loop body
LE: loop exit
PB: predicated region body
PF: predicated region fallthrough
CT: control target
= control target key end

     0   :  { %s502_s9 = smov 0   ;;  %s504_s10 = smov 0   ;;  %s538_s0 = inlined_call_operand.vmem [shape: f32[2,4,256], index: 0, kind: input, shape index: {}]   ;;  %s539_s1 = inlined_call_operand.vmem [shape: f32[2,1,4,1], index: 1, kind: output, shape index: {0}]   ;;  %s540_s2 = inlined_call_operand.vmem [shape: f32[2,1,4,4], index: 2, kind: output, shape index: {1}]  }
   0x1   :  { %s506_s11 = smov 0  }
   0x2 LB: > { %s32_s12 = sadd.s32 1, %s480_s10  ;;  %p429_p0 = scmp.ge.s32.totalorder %s484_s11, 1  ;;  %s484_s11 = sphi %s506_s11, %s13_s11   ;;  %s480_s10 = sphi %s504_s10, %s542_s10   ;;  %s476_s9 = sphi %s502_s9, %s541_s9  }
   0x3   : > { %p34_p1 = scmp.ge.s32.totalorder %s32_s12, 2  ;;  %p157_p2 = scmp.lt.s32.totalorder %s484_s11, 3 }
   0x5   : > { %s544_s12 = smov (%p34_p1, %s32_s12), 0  ;;  %p158_p3 = pnand %p429_p0, %p157_p2 }
   0x6   : > { %p199_p4 = scmp.lt.s32.totalorder (!%p158_p3), %s476_s9, 1 }
   0x7   : > { %161 = sbr.rel (%p158_p3) target bundleno = 174 (0xae), region = 24 }
   0xc   : > { %s546_s9 = smov (!%p199_p4, %s476_s9), 1  ;;  %vm241_vm0 = vcmask 1043456   ;;  %vm231_vm1 = vcmask 27648   ;;  %vm229_vm2 = vcmask 3072   ;;  %v486_v10 = vmov 0.0  }
   0xd   : > { %s436_s13 = sshll.u32 %s546_s9, 3  ;;  %s432_s17 = sshll.u32 %s546_s9, 2 }
   0xe   : > { %s206_s16 = scalar_lea.vmem %s538_s0, %s436_s13  ;;  %s224_s20 = scalar_lea.vmem %s540_s2, %s432_s17 }
   0xf   : > { %v233_v0 = vld [vmem:[%s206_s16] sm:$0xff]  ;;  %s217_s23 = scalar_lea.vmem %s539_s1, %s432_s17  ;;  %232 = vst.msk [vmem:[%s224_s20] sm:$0xf] %vm231_vm1, %v486_v10 }
  0x10   : > { %236 = vst [vmem:[#allocation1] ss:$2 sm:$0xff] %v233_v0 }
  0x11   : > { %230 = vst.msk [vmem:[%s217_s23] sm:$0xf] %vm229_vm2, %v486_v10 }
  0x16   : > { %v250_v15 = vld [vmem:[%s224_s20] sm:$0xf] }
  0x17   : > { %v237_v1 = vld.sshfl [vmem:[#allocation1] sm:$0xff pattern:$0x75316420]  ;;  %v238_v2 = vld.sshfl [vmem:[#allocation1 + $0x8] sm:$0xff pattern:$0x75316420] }
  0x18   : > { %251 = vst [vmem:[#allocation1] ss:$2 sm:$0xff] %v233_v0  ;;  %v242_v3 = vsel %vm241_vm0, %v237_v1, 0.0  ;;  %v243_v4 = vsel %vm241_vm0, %v238_v2, 0.0  ;;  %v234_v11 = vld [vmem:[%s217_s23] sm:$0xf] }
  0x19   : > { %v244_v5 = vadd.f32 %v243_v4, %v242_v3 }
  0x1b   : > { %245 = vadd.xlane.f32.xlu0 %v244_v5 }
  0x1f   : > { %v252_v6 = vld.sshfl [vmem:[#allocation1] sm:$0xff pattern:$0x75316420]  ;;  %v253_v7 = vld.sshfl [vmem:[#allocation1 + $0x8] sm:$0xff pattern:$0x75316420] }
  0x20   : > { %256 = vst [vmem:[#allocation1] ss:$2 sm:$0xff] %v233_v0 }
  0x27   : > { %v257_v8 = vld.sshfl [vmem:[#allocation1] sm:$0xff pattern:$0x75316420]  ;;  %v258_v9 = vld.sshfl [vmem:[#allocation1 + $0x8] sm:$0xff pattern:$0x75316420] }
  0x28   : > { %276 = vmatpush.xpose.msra.mxu0 %v257_v8  ;;  %296 = vmatpush.xpose.msra.mxu1 %v258_v9 }
  0x2b   : > { %277 = vmatmul.f32.vlgmr.msra.gmra.mxu0 %v252_v6  ;;  %297 = vmatmul.f32.vlgmr.msra.gmra.mxu1 %v253_v7 }
  0x8e   : > { %v246_v12 = vpop.xlane.xlu0 %245 }
  0x8f   : > { %v247_v13 = vadd.f32 %v246_v12, %v234_v11 }
  0x91   : > { %249 = vst.msk [vmem:[%s217_s23] sm:$0xf] %vm229_vm2, %v247_v13 }
  0xa8   : > { %v278_v14 = vpop.f32.mrf.mxu0  ;;  %v298_v16 = vpop.f32.mrf.mxu1 }
  0xa9   : > { %v299_v17 = vadd.f32 %v298_v16, %v278_v14 }
  0xab   : > { %v301_v18 = vadd.f32 %v299_v17, %v250_v15 }
  0xad   : > { %303 = vst.msk [vmem:[%s224_s20] sm:$0xf] %vm231_vm1, %v301_v18 }
  0xae PF: > { %s13_s11 = sadd.s32 1, %s484_s11   ;;  %s541_s9 = smov %s480_s10 }
  0xaf   : > { %p10_p5 = scmp.ge.s32.totalorder %s13_s11, 4   ;;  %s542_s10 = smov %s544_s12 }
  0xb1   :  { %12 = sbr.rel (!%p10_p5) target bundleno = 2 (0x2), region = 70 }

// kernel: conv_bn_relu.3
= control target key start
LH: loop header
LB: loop body
LE: loop exit
PB: predicated region body
PF: predicated region fallthrough
CT: control target
= control target key end

     0   :  { %s450_s12 = smov 0   ;;  %s452_s13 = smov 0   ;;  %s489_s0 = inlined_call_operand.vmem [shape: f32[2,4,256], index: 0, kind: input, shape index: {}]   ;;  %s490_s1 = inlined_call_operand.vmem [shape: f32[8,4], index: 1, kind: input, shape index: {}]   ;;  %s491_s2 = inlined_call_operand.vmem [shape: f32[8,1], index: 2, kind: input, shape index: {}]   ;;  %s492_s3 = inlined_call_operand.vmem [shape: f32[2,8,256], index: 3, kind: output, shape index: {}]  }
   0x1   :  { %s454_s14 = smov 0  }
   0x2 LB: > { %s25_s15 = sadd.s32 1, %s423_s13  ;;  %p366_p0 = scmp.ge.s32.totalorder %s427_s14, 1  ;;  %s427_s14 = sphi %s454_s14, %s13_s14   ;;  %s423_s13 = sphi %s452_s13, %s494_s13   ;;  %s419_s12 = sphi %s450_s12, %s493_s12  }
   0x3   : > { %p27_p1 = scmp.ge.s32.totalorder %s25_s15, 2  ;;  %p158_p2 = scmp.lt.s32.totalorder %s427_s14, 3 }
   0x5   : > { %s496_s15 = smov (%p27_p1, %s25_s15), 0  ;;  %p159_p3 = pnand %p366_p0, %p158_p2 }
   0x6   : > { %p191_p4 = scmp.lt.s32.totalorder (!%p159_p3), %s419_s12, 1 }
   0x7   : > { %162 = sbr.rel (%p159_p3) target bundleno = 157 (0x9d), region = 32 }
   0xc   : > { %v212_v0 = vld [vmem:[%s491_s2] sm:$0xff]  ;;  %v429_v1 = vmov 0   ;;  %s498_s12 = smov (!%p191_p4, %s419_s12), 1  ;;  %vm226_vm0 = vcmask 1043456   ;;  %vm222_vm1 = vcmask 31744  }
   0xd   : > { %404 = vset.pattern.permute.xlu0 %v429_v1  ;;  %s377_s18 = sshll.u32 %s498_s12, 3  ;;  %v210_v3 = vld [vmem:[%s490_s1] sm:$0xff]  ;;  %s378_s24 = sshll.u32 %s498_s12, 4 }
   0xe   : > { %215 = vperm.xlu0 %404, %v212_v0   ;;  %s198_s21 = scalar_lea.vmem %s489_s0, %s377_s18  ;;  %s208_s27 = scalar_lea.vmem %s492_s3, %s378_s24 }
   0xf   : > { %v211_v2 = vld [vmem:[%s198_s21] sm:$0xff] }
  0x10   : > { %219 = vst [vmem:[#allocation1] ss:$2 sm:$0xff] %v211_v2 }
  0x17   : > { %v220_v4 = vld.sshfl [vmem:[#allocation1] sm:$0xff pattern:$0x75316420]  ;;  %v221_v5 = vld.sshfl [vmem:[#allocation1 + $0x8] sm:$0xff pattern:$0x75316420] }
  0x18   : > { %371 = vmatpush.msk.msra.mxu0 %vm226_vm0, %v220_v4  ;;  %373 = vmatpush.msk.msra.mxu1 %vm226_vm0, %v221_v5 }
  0x19   : > { %372 = vmatmul.msk.f32.vlgmr.msra.gmra.mxu0 %vm222_vm1, %v210_v3  ;;  %374 = vmatmul.msk.f32.vlgmr.msra.gmra.mxu1 %vm222_vm1, %v210_v3 }
  0x80   : > { %v216_v6 = vpop.permute.xlu0 %215 }
  0x96   : > { %v248_v7 = vpop.f32.mrf.mxu0  ;;  %v268_v8 = vpop.f32.mrf.mxu1 }
  0x97   : > { %v249_v9 = vadd.f32 %v248_v7, %v216_v6  ;;  %v269_v10 = vadd.f32 %v268_v8, %v216_v6 }
  0x99   : > { %v271_v11 = vmax.f32 %v249_v9, 0.0  ;;  %v272_v12 = vmax.f32 %v269_v10, 0.0 }
  0x9b   : > { %273 = vst [vmem:[%s208_s27] sm:$0xff] %v271_v11 }
  0x9c   : > { %274 = vst [vmem:[%s208_s27 + $0x8] sm:$0xff] %v272_v12 }
  0x9d PF: > { %s13_s14 = sadd.s32 1, %s427_s14   ;;  %s493_s12 = smov %s423_s13 }
  0x9e   : > { %p10_p5 = scmp.ge.s32.totalorder %s13_s14, 4   ;;  %s494_s13 = smov %s496_s15 }
  0xa0   :  { %12 = sbr.rel (!%p10_p5) target bundleno = 2 (0x2), region = 62 }

</bundles_post_ra>
